<compile_context>
chip_gen: v5e
topology: v5e:2x2
jax: 0.10.0
libtpu: 0.0.40
codegen_flags: <defaults>
</compile_context>

<pallas_src>
import functools

import jax
import jax.numpy as jnp
from jax.experimental import pallas as pl
from jax.experimental.pallas import tpu as pltpu


def _angle_linear_kernel(x_ref, w_ref, o_ref, acc_ref, xsq_ref, wsq_ref):
    k = pl.program_id(2)

    @pl.when(k == 0)
    def _init():
        acc_ref[...] = jnp.zeros_like(acc_ref)
        xsq_ref[...] = jnp.zeros_like(xsq_ref)
        wsq_ref[...] = jnp.zeros_like(wsq_ref)

    x = x_ref[...]
    w = w_ref[...]

    # Raw (un-normalized) partial product on the MXU, f32 accumulation.
    acc_ref[...] += jnp.dot(x, w, preferred_element_type=jnp.float32)

    # Fused K-reductions for the row / column squared norms (f32 accum).
    xf = x.astype(jnp.float32)
    wf = w.astype(jnp.float32)
    xsq_ref[...] += jnp.sum(xf * xf, axis=1, keepdims=True)   # (tm, 1)
    wsq_ref[...] += jnp.sum(wf * wf, axis=0, keepdims=True)   # (1, tn)

    @pl.when(k == pl.num_programs(2) - 1)
    def _finalize():
        eps = jnp.float32(1e-12)          # F.normalize default eps
        eps_sq = eps * eps
        # rsqrt(max(sumsq, eps^2)) == 1 / max(sqrt(sumsq), eps); EUP op.
        inv_x = jax.lax.rsqrt(jnp.maximum(xsq_ref[...], eps_sq))   # (tm, 1)
        inv_w = jax.lax.rsqrt(jnp.maximum(wsq_ref[...], eps_sq))   # (1, tn)
        cos = acc_ref[...] * inv_x * inv_w
        cos = jnp.clip(cos, -1.0 + 1e-07, 1.0 - 1e-07)
        o_ref[...] = cos.astype(o_ref.dtype)


def _pick_tile(dim, preferred, align):
    """Largest preferred tile dividing `dim` with hw alignment; else full dim
    (a block equal to the full array dim is always legal)."""
    for t in preferred:
        if dim % t == 0 and t % align == 0:
            return t
    return dim


@functools.partial(jax.jit, static_argnames=("tm", "tn", "tk"))
def _angle_simple_linear_impl(x, weight, *, tm, tn, tk):
    B, K = x.shape
    _, N = weight.shape

    grid = (B // tm, N // tn, K // tk)

    cost = pl.CostEstimate(
        flops=2 * B * K * N + 2 * (B * K + K * N),
        transcendentals=B + N,
        bytes_accessed=(B * K + K * N + B * N) * x.dtype.itemsize,
    )

    return pl.pallas_call(
        _angle_linear_kernel,
        out_shape=jax.ShapeDtypeStruct((B, N), x.dtype),
        grid_spec=pltpu.PrefetchScalarGridSpec(
            num_scalar_prefetch=0,
            grid=grid,
            in_specs=[
                pl.BlockSpec((tm, tk), lambda i, j, k: (i, k)),
                pl.BlockSpec((tk, tn), lambda i, j, k: (k, j)),
            ],
            out_specs=pl.BlockSpec((tm, tn), lambda i, j, k: (i, j)),
            scratch_shapes=[
                pltpu.VMEM((tm, tn), jnp.float32),   # raw x@W accumulator
                pltpu.VMEM((tm, 1), jnp.float32),    # row sum-of-squares of x
                pltpu.VMEM((1, tn), jnp.float32),    # col sum-of-squares of W
            ],
        ),
        compiler_params=pltpu.CompilerParams(
            dimension_semantics=("parallel", "parallel", "arbitrary"),
        ),
        cost_estimate=cost,
    )(x, weight)


def angle_simple_linear(x, weight):
    """x: (B, in_features), weight: (in_features, out_features).

    Returns a 1-tuple (cos_theta,) matching the PyTorch module's forward.
    """
    B, K = x.shape
    K2, N = weight.shape
    assert K == K2, (K, K2)

    # Tile choice: (8, 128)-aligned, as large as divides the problem; sized so
    # double-buffered f32 tiles stay well under v7x's smaller VMEM budget
    # (64 MiB physical / 32 MiB default-scoped) even at the largest picks.
    tm = _pick_tile(B, (256, 128, 64, 32, 16, 8), 8)
    tn = _pick_tile(N, (512, 256, 128), 128)
    tk = _pick_tile(K, (512, 256, 128), 128)

    out = _angle_simple_linear_impl(x, weight, tm=tm, tn=tn, tk=tk)
    return (out,)


def init_angle_weight(key, in_features, out_features):
    """Mimic: torch.Tensor(in,out).uniform_(-1,1).renorm_(2,1,1e-5).mul_(1e5)."""
    w = jax.random.uniform(key, (in_features, out_features),
                           minval=-1.0, maxval=1.0, dtype=jnp.float32)
    # renorm_(p=2, dim=1, maxnorm=1e-5): clip each column's L2 norm to <= 1e-5.
    col_norm = jnp.sqrt(jnp.sum(w * w, axis=0, keepdims=True))
    scale = jnp.where(col_norm > 1e-05, 1e-05 / (col_norm + 1e-07), 1.0)
    w = w * scale
    return w * 100000.0


if __name__ == "__main__":
    B = 32
    in_features = 384     # -> tk = 128, 3 reduction steps
    out_features = 640    # -> tn = 128, 5 output-column tiles

    key = jax.random.PRNGKey(0)
    kx, kw = jax.random.split(key)
    x = jax.random.normal(kx, (B, in_features), dtype=jnp.float32)
    weight = init_angle_weight(kw, in_features, out_features)

    (cos_theta,) = angle_simple_linear(x, weight)
    cos_theta = jax.block_until_ready(cos_theta)

    # Pure-JAX reference (normalize-then-matmul, exactly the PyTorch forward).
    xn = x / jnp.maximum(jnp.linalg.norm(x, axis=1, keepdims=True), 1e-12)
    wn = weight / jnp.maximum(jnp.linalg.norm(weight, axis=0, keepdims=True), 1e-12)
    ref = jnp.clip(xn @ wn, -1.0 + 1e-07, 1.0 - 1e-07)

    assert cos_theta.shape == (B, out_features)
    assert jnp.allclose(cos_theta, ref, atol=1e-5, rtol=1e-5), (
        float(jnp.max(jnp.abs(cos_theta - ref))))

    print("KERNEL_OK")
</pallas_src>

<mosaic_0001>
module attributes {stable_mosaic.version = 11 : i64} {
  func.func @_angle_linear_kernel(%arg0: i32, %arg1: i32, %arg2: i32, %arg3: memref<32x128xf32, #tpu.memory_space<vmem>>, %arg4: memref<128x128xf32, #tpu.memory_space<vmem>>, %arg5: memref<32x128xf32, #tpu.memory_space<vmem>>, %arg6: memref<32x128xf32, #tpu.memory_space<vmem>>, %arg7: memref<32x1xf32, #tpu.memory_space<vmem>>, %arg8: memref<1x128xf32, #tpu.memory_space<vmem>>) attributes {dimension_semantics = [#tpu.dimension_semantics<parallel>, #tpu.dimension_semantics<parallel>, #tpu.dimension_semantics<arbitrary>], iteration_bounds = array<i64: 1, 5, 3>, scalar_prefetch = 0 : i64, scratch_operands = 3 : i64, tpu.core_type = #tpu.core_type<tc>, window_params = [{transform_indices = @transform_0, window_bounds = array<i64: 32, 128>}, {transform_indices = @transform_1, window_bounds = array<i64: 128, 128>}, {transform_indices = @transform_2, window_bounds = array<i64: 32, 128>}]} {
    %c0_i32 = arith.constant 0 : i32
    %0 = arith.cmpi eq, %arg2, %c0_i32 : i32
    %1 = arith.extui %0 : i1 to i32
    %c0_i32_0 = arith.constant 0 : i32
    %2 = arith.cmpi ne, %1, %c0_i32_0 : i32
    scf.if %2 {
      %cst_19 = arith.constant 0.000000e+00 : f32
      %24 = vector.broadcast %cst_19 : f32 to vector<32x128xf32>
      %c0_20 = arith.constant 0 : index
      %c0_21 = arith.constant 0 : index
      %25 = vector.load %arg6[%c0_20, %c0_21] : memref<32x128xf32, #tpu.memory_space<vmem>>, vector<32x128xf32>
      tpu.vector_store %arg6[%c0_20, %c0_21], %24 {strides = array<i32>} : memref<32x128xf32, #tpu.memory_space<vmem>>, vector<32x128xf32>,
      %cst_22 = arith.constant 0.000000e+00 : f32
      %26 = vector.broadcast %cst_22 : f32 to vector<32x1xf32>
      %c0_23 = arith.constant 0 : index
      %c0_24 = arith.constant 0 : index
      %27 = vector.load %arg7[%c0_23, %c0_24] : memref<32x1xf32, #tpu.memory_space<vmem>>, vector<32x1xf32>
      tpu.vector_store %arg7[%c0_23, %c0_24], %26 {strides = array<i32>} : memref<32x1xf32, #tpu.memory_space<vmem>>, vector<32x1xf32>,
      %cst_25 = arith.constant 0.000000e+00 : f32
      %28 = vector.broadcast %cst_25 : f32 to vector<1x128xf32>
      %c0_26 = arith.constant 0 : index
      %c0_27 = arith.constant 0 : index
      %29 = vector.load %arg8[%c0_26, %c0_27] : memref<1x128xf32, #tpu.memory_space<vmem>>, vector<1x128xf32>
      tpu.vector_store %arg8[%c0_26, %c0_27], %28 {strides = array<i32>} : memref<1x128xf32, #tpu.memory_space<vmem>>, vector<1x128xf32>,
    } else {
    }
    %c0 = arith.constant 0 : index
    %c0_1 = arith.constant 0 : index
    %3 = vector.load %arg3[%c0, %c0_1] : memref<32x128xf32, #tpu.memory_space<vmem>>, vector<32x128xf32>
    %c0_2 = arith.constant 0 : index
    %c0_3 = arith.constant 0 : index
    %4 = vector.load %arg4[%c0_2, %c0_3] : memref<128x128xf32, #tpu.memory_space<vmem>>, vector<128x128xf32>
    %c0_4 = arith.constant 0 : index
    %c0_5 = arith.constant 0 : index
    %5 = vector.load %arg6[%c0_4, %c0_5] : memref<32x128xf32, #tpu.memory_space<vmem>>, vector<32x128xf32>
    %cst = arith.constant dense<0.000000e+00> : vector<32x128xf32>
    %6 = tpu.matmul %3, %4, %cst {dimension_numbers = #tpu.dot_dimension_numbers<[1], [0], [0], [1], [0, 0, 1, 1], [], []>} : vector<32x128xf32>, vector<128x128xf32>, vector<32x128xf32> -> vector<32x128xf32>
    %7 = arith.addf %5, %6 : vector<32x128xf32>
    %c0_6 = arith.constant 0 : index
    %c0_7 = arith.constant 0 : index
    %8 = vector.load %arg6[%c0_6, %c0_7] : memref<32x128xf32, #tpu.memory_space<vmem>>, vector<32x128xf32>
    tpu.vector_store %arg6[%c0_6, %c0_7], %7 {strides = array<i32>} : memref<32x128xf32, #tpu.memory_space<vmem>>, vector<32x128xf32>,
    %c0_8 = arith.constant 0 : index
    %c0_9 = arith.constant 0 : index
    %9 = vector.load %arg7[%c0_8, %c0_9] : memref<32x1xf32, #tpu.memory_space<vmem>>, vector<32x1xf32>
    %10 = arith.mulf %3, %3 : vector<32x128xf32>
    %cst_10 = arith.constant dense<0.000000e+00> : vector<32xf32>
    %11 = vector.multi_reduction <add>, %10, %cst_10 [1] : vector<32x128xf32> to vector<32xf32>
    %12 = vector.shape_cast %11 : vector<32xf32> to vector<32x1xf32>
    %13 = arith.addf %9, %12 : vector<32x1xf32>
    %c0_11 = arith.constant 0 : index
    %c0_12 = arith.constant 0 : index
    %14 = vector.load %arg7[%c0_11, %c0_12] : memref<32x1xf32, #tpu.memory_space<vmem>>, vector<32x1xf32>
    tpu.vector_store %arg7[%c0_11, %c0_12], %13 {strides = array<i32>} : memref<32x1xf32, #tpu.memory_space<vmem>>, vector<32x1xf32>,
    %c0_13 = arith.constant 0 : index
    %c0_14 = arith.constant 0 : index
    %15 = vector.load %arg8[%c0_13, %c0_14] : memref<1x128xf32, #tpu.memory_space<vmem>>, vector<1x128xf32>
    %16 = arith.mulf %4, %4 : vector<128x128xf32>
    %cst_15 = arith.constant dense<0.000000e+00> : vector<128xf32>
    %17 = vector.multi_reduction <add>, %16, %cst_15 [0] : vector<128x128xf32> to vector<128xf32>
    %18 = vector.shape_cast %17 : vector<128xf32> to vector<1x128xf32>
    %19 = arith.addf %15, %18 : vector<1x128xf32>
    %c0_16 = arith.constant 0 : index
    %c0_17 = arith.constant 0 : index
    %20 = vector.load %arg8[%c0_16, %c0_17] : memref<1x128xf32, #tpu.memory_space<vmem>>, vector<1x128xf32>
    tpu.vector_store %arg8[%c0_16, %c0_17], %19 {strides = array<i32>} : memref<1x128xf32, #tpu.memory_space<vmem>>, vector<1x128xf32>,
    %c2_i32 = arith.constant 2 : i32
    %21 = arith.cmpi eq, %arg2, %c2_i32 : i32
    %22 = arith.extui %21 : i1 to i32
    %c0_i32_18 = arith.constant 0 : i32
    %23 = arith.cmpi ne, %22, %c0_i32_18 : i32
    scf.if %23 {
      %cst_19 = arith.constant 9.99999996E-13 : f32
      %cst_20 = arith.constant 9.99999996E-13 : f32
      %24 = arith.mulf %cst_19, %cst_20 : f32
      %c0_21 = arith.constant 0 : index
      %c0_22 = arith.constant 0 : index
      %25 = vector.load %arg7[%c0_21, %c0_22] : memref<32x1xf32, #tpu.memory_space<vmem>>, vector<32x1xf32>
      %26 = vector.broadcast %24 : f32 to vector<32x1xf32>
      %27 = arith.maximumf %25, %26 : vector<32x1xf32>
      %28 = math.rsqrt %27 : vector<32x1xf32>
      %c0_23 = arith.constant 0 : index
      %c0_24 = arith.constant 0 : index
      %29 = vector.load %arg8[%c0_23, %c0_24] : memref<1x128xf32, #tpu.memory_space<vmem>>, vector<1x128xf32>
      %30 = vector.broadcast %24 : f32 to vector<1x128xf32>
      %31 = arith.maximumf %29, %30 : vector<1x128xf32>
      %32 = math.rsqrt %31 : vector<1x128xf32>
      %c0_25 = arith.constant 0 : index
      %c0_26 = arith.constant 0 : index
      %33 = vector.load %arg6[%c0_25, %c0_26] : memref<32x128xf32, #tpu.memory_space<vmem>>, vector<32x128xf32>
      %34 = vector.broadcast %28 : vector<32x1xf32> to vector<32x128xf32>
      %35 = arith.mulf %33, %34 : vector<32x128xf32>
      %36 = vector.broadcast %32 : vector<1x128xf32> to vector<32x128xf32>
      %37 = arith.mulf %35, %36 : vector<32x128xf32>
      %cst_27 = arith.constant -0.99999988 : f32
      %cst_28 = arith.constant 0.99999988 : f32
      %38 = vector.broadcast %cst_27 : f32 to vector<32x128xf32>
      %39 = arith.maximumf %38, %37 : vector<32x128xf32>
      %40 = vector.broadcast %cst_28 : f32 to vector<32x128xf32>
      %41 = arith.minimumf %40, %39 : vector<32x128xf32>
      %c0_29 = arith.constant 0 : index
      %c0_30 = arith.constant 0 : index
      %42 = vector.load %arg5[%c0_29, %c0_30] : memref<32x128xf32, #tpu.memory_space<vmem>>, vector<32x128xf32>
      tpu.vector_store %arg5[%c0_29, %c0_30], %41 {strides = array<i32>} : memref<32x128xf32, #tpu.memory_space<vmem>>, vector<32x128xf32>,
    } else {
    }
    return
  }
  func.func @transform_0(%arg0: i32, %arg1: i32, %arg2: i32) -> (i32, i32) {
    %c0_i32 = arith.constant 0 : i32
    return %arg0, %arg2 : i32, i32
  }
  func.func @transform_1(%arg0: i32, %arg1: i32, %arg2: i32) -> (i32, i32) {
    %c0_i32 = arith.constant 0 : i32
    return %arg2, %arg1 : i32, i32
  }
  func.func @transform_2(%arg0: i32, %arg1: i32, %arg2: i32) -> (i32, i32) {
    %c0_i32 = arith.constant 0 : i32
    return %arg0, %arg1 : i32, i32
  }
}

</mosaic_0001>

<bundles_post_ra>
// kernel: _angle_simple_linear_impl.1
= control target key start
LH: loop header
LB: loop body
LE: loop exit
PB: predicated region body
PF: predicated region fallthrough
CT: control target
= control target key end

     0   :  { %s1457_s0 = inlined_call_operand.hbm [shape: f32[32,384], index: 0, kind: input, shape index: {}]   ;;  %s1458_s1 = inlined_call_operand.hbm [shape: f32[384,640], index: 1, kind: input, shape index: {}]   ;;  %s1459_s2 = inlined_call_operand.hbm [shape: f32[32,640], index: 2, kind: output, shape index: {}]  }
   0x1   :  { %1468 = sst [smem:[#allocation22_spill]] %s1457_s0 }
   0x2   :  { %1469 = sst [smem:[#allocation23_spill]] %s1459_s2 }
   0x3   :  { %7 = vsyncpa [#allocation6], 0 }
   0x4   :  { %9 = vsyncpa [#allocation6 + $0x1], 0 }
   0x5   :  { %10 = vsyncpa [#allocation9], 0 }
   0x6   :  { %12 = vsyncpa [#allocation9 + $0x1], 0 }
   0x7   :  { %13 = vsyncpa [#allocation7], 0 }
   0x8   :  { %15 = vsyncpa [#allocation7 + $0x1], 0  ;;  %s1084_s9 = smov 0   ;;  %s1086_s10 = smov 0  }
   0x9   :  { %s1088_s11 = smov 0   ;;  %s1090_s12 = smov 0  }
   0xa   :  { %s1092_s13 = smov 0   ;;  %s1094_s14 = smov 0  }
   0xb   :  { %s1096_s15 = smov 0   ;;  %s1098_s16 = smov 0  }
   0xc   :  { %s1100_s17 = smov 0   ;;  %s1102_s18 = smov 0  }
   0xd   :  { %s1104_s19 = smov 0   ;;  %s1106_s20 = smov 0  }
   0xe   :  { %s1108_s21 = smov 0   ;;  %s1110_s22 = smov 0  }
   0xf LB: > { %1470 = sst [smem:[#allocation14_spill]] %s1026_s14  ;;  %s623_s23 = sadd.s32 4294967295, %s1058_s22   ;;  %s1058_s22 = sphi %s1110_s22, %s21_s22   ;;  %s1054_s21 = sphi %s1108_s21, %s1512_s21   ;;  %s1050_s20 = sphi %s1106_s20, %s1511_s20   ;;  %s1046_s19 = sphi %s1104_s19, %s1510_s19   ;;  %s1042_s18 = sphi %s1102_s18, %s1509_s18   ;;  %s1038_s17 = sphi %s1100_s17, %s1499_s17   ;;  %s1034_s16 = sphi %s1098_s16, %s1508_s16   ;;  %s1030_s15 = sphi %s1096_s15, %s1507_s15   ;;  %s1026_s14 = sphi %s1094_s14, %s1497_s14   ;;  %s1022_s13 = sphi %s1092_s13, %s1506_s13   ;;  %s1018_s12 = sphi %s1090_s12, %s1505_s12   ;;  %s1014_s11 = sphi %s1088_s11, %s1504_s11   ;;  %s1010_s10 = sphi %s1086_s10, %s1503_s10   ;;  %s1006_s9 = sphi %s1084_s9, %s1502_s9  }
  0x10   : > { %1471 = sst [smem:[#allocation15_spill]] %s1038_s17  ;;  %s33_s24 = sadd.s32 1, %s1050_s20 }
  0x11   : > { %1472 = sst [smem:[#allocation16_spill]] %s1046_s19  ;;  %p1154_p0 = scmp.ge.s32.totalorder %s33_s24, 3 }
  0x12   : > { %s49_s26 = sadd.s32 1, %s1038_s17  ;;  %p56_p1 = scmp.ne.s32.totalorder %s1038_s17, %s1034_s16 }
  0x13   : > { %p57_p2 = scmp.eq.s32.totalorder %s1058_s22, 0  ;;  %s1514_s24 = smov (%p1154_p0, %s33_s24), 0 }
  0x14   : > { %1474 = sst [smem:[#allocation17_spill]] %s1514_s24  ;;  %p62_p4 = scmp.ne.s32.totalorder %s1034_s16, %s1030_s15 }
  0x15   : > { %p1168_p3 = por %p57_p2, %p56_p1  ;;  %s1175_s28 = ssub.s32 %s1050_s20, %s1514_s24 }
  0x16   : > { %p1177_p5 = scmp.eq.s32.totalorder %s623_s23, 0  ;;  %p47_p6 = scmp.eq.s32.totalorder %s1175_s28, 0 }
  0x17   : > { %p1182_p7 = scmp.eq.s32.totalorder %s623_s23, 14  ;;  %p1462_p9 = scmp.lt.s32.totalorder %s1058_s22, 15 }
  0x18   : > { %p1188_p8 = por %p1177_p5, %p62_p4  ;;  %s142_s5 = sand.u32 1, %s1038_s17  }
  0x19   : > { %s1193_s4 = scalar_select %p47_p6, %s1038_s17, %s49_s26  }
  0x1a   : > { %s627_s6 = sshll.u32 %s142_s5, 5  ;;  %s628_s7 = sshll.u32 %s1050_s20, 3 }
  0x1b   : > { %1479 = sst [smem:[#allocation18_spill]] %s1193_s4  ;;  %s146_s24 = scalar_lea.vmem [#allocation5], %s627_s6 }
  0x1c   : > { %s1480_s0 = sld [smem:[#allocation22_spill]]  ;;  %s156_s2 = sshll.u32 %s146_s24, 4  ;;  %s157_s2 = int_to_ptr.vmem [resolvable:$true] %s156_s2 }
  0x1d   : > { %p703_p10 = pnand %p1462_p9, %p1168_p3  ;;  %s143_s26 = scalar_lea.sflag [#allocation6], %s142_s5 }
  0x1e   : > { %s1463_s6 = smov 128   ;;  %s1464_s8 = smov 8  }
  0x1f   : > { %p633_p11 = scmp.ge.s32.totalorder %s1058_s22, 1  ;;  %p188_p12 = scmp.lt.s32.totalorder %s1058_s22, 16 }
  0x20   : > { %s624_s27 = sadd.s32 4294967294, %s1058_s22   ;;  %s36_s5 = sadd.s32 1, %s1054_s21 }
  0x21   : > { %p1209_p13 = pnand %p633_p11, %p188_p12  ;;  %s77_s15 = sadd.s32 1, %s1026_s14 }
  0x22   : > { %s153_s23 = scalar_lea.hbm %s1480_s0, %s628_s7  ;;  %s1060_s7 = smov 384  }
  0x23   : > { %s154_s19 = sshll.u32 %s153_s23, 4  ;;  %s1516_s5 = smov (!%p1154_p0, %s36_s5), %s1054_s21  ;;  %s155_s19 = int_to_ptr.hbm [resolvable:$true] %s154_s19 }
  0x24   : > { %705 = dma.hbm_to_vmem [thread:$0]  (!%p703_p10), %s155_s19, 512, %s157_s2, %s143_s26, %s1060_s7, %s1463_s6, %s1464_s8  }
  0x25   : > { %p84_p1 = scmp.ne.s32.totalorder %s1026_s14, %s1022_s13  ;;  %p90_p3 = scmp.ne.s32.totalorder %s1022_s13, %s1018_s12 }
  0x26   : > { %p38_p4 = scmp.ge.s32.totalorder %s1516_s5, 5  ;;  %s105_s2 = sadd.s32 1, %s1014_s11 }
  0x27   : > { %p1226_p6 = por %p84_p1, %p57_p2  ;;  %p1232_p10 = por %p90_p3, %p1177_p5 }
  0x28   : > { %s1518_s5 = smov (%p38_p4, %s1516_s5), 0  ;;  %p115_p0 = scmp.ne.s32.totalorder %s1014_s11, %s1010_s10 }
  0x29   : > { %1484 = sst [smem:[#allocation19_spill]] %s1518_s5  ;;  %p121_p11 = scmp.ne.s32.totalorder %s1010_s10, %s1006_s9 }
  0x2a   : > { %s73_s12 = ssub.s32 %s1054_s21, %s1518_s5  ;;  %p122_p12 = scmp.eq.s32.totalorder %s624_s27, 14 }
  0x2b   : > { %s74_s25 = sor.u32 %s73_s12, %s1175_s28  ;;  %p103_p2 = scmp.eq.s32.totalorder %s73_s12, 0 }
  0x2c   : > { %p75_p1 = scmp.eq.s32.totalorder %s74_s25, 0  ;;  %p1247_p9 = por %p1182_p7, %p115_p0 }
  0x2d   : > { %s1252_s26 = scalar_select %p103_p2, %s1014_s11, %s105_s2  }
  0x2e   : > { %s1255_s7 = scalar_select %p75_p1, %s1026_s14, %s77_s15  }
  0x2f   : > { %1486 = sst [smem:[#allocation20_spill]] %s1252_s26  ;;  %p1257_p5 = por %p122_p12, %p121_p11 }
  0x30   : > { %1487 = sst [smem:[#allocation21_spill]] %s1255_s7  ;;  %s166_s8 = sand.u32 1, %s1026_s14  }
  0x31   : > { %s629_s0 = sshll.u32 %s166_s8, 7  ;;  %s695_s5 = smul.u32 80, %s1050_s20 }
  0x32   : > { %s170_s27 = scalar_lea.vmem [#allocation8], %s629_s0  ;;  %p1489_p3 = scmp.lt.s32.totalorder %s1058_s22, 15 }
  0x33   : > { %s180_s28 = sshll.u32 %s170_s27, 4  ;;  %s175_s30 = sadd.s32 %s1054_s21, %s695_s5  ;;  %s181_s28 = int_to_ptr.vmem [resolvable:$true] %s180_s28 }
  0x34   : > { %p706_p4 = pnand %p1489_p3, %p1226_p6  ;;  %s632_s12 = sshll.u32 %s175_s30, 3 }
  0x35   : > { %s177_s15 = scalar_lea.hbm %s1458_s1, %s632_s12  ;;  %s167_s17 = scalar_lea.sflag [#allocation9], %s166_s8 }
  0x36   : > { %s178_s4 = sshll.u32 %s177_s15, 4  ;;  %s1063_s7 = smov 640   ;;  %s179_s4 = int_to_ptr.hbm [resolvable:$true] %s178_s4 }
  0x37   : > { %s1490_s26 = smov 8   ;;  %s1491_s14 = smov 128  }
  0x38   : > { %708 = dma.hbm_to_vmem [thread:$0]  (!%p706_p4), %s179_s4, 2048, %s181_s28, %s167_s17, %s1063_s7, %s1491_s14, %s1490_s26  }
  0x39   : > { %192 = sbr.rel (%p1209_p13) target bundleno = 427 (0x1ab), region = 28  ;;  %s194_s0 = sand.u32 (!%p1209_p13), 1, %s1034_s16  }
  0x3a   : > { %s634_s5 = sshll.u32 (!%p1209_p13), %s194_s0, 5  ;;  %s195_s19 = scalar_lea.sflag (!%p1209_p13), [#allocation6], %s194_s0 }
  0x3b   : > { %s1276_s27 = scalar_lea.vmem (!%p1209_p13), [#allocation5], %s634_s5 }
  0x3e   : > { %993 = dma.done.wait (%p1188_p8), %s195_s19, 512  }
  0x3f   : > { %995 = vsyncadd (%p1188_p8), %s195_s19, 4294966784  ;;  %s204_s8 = sand.u32 1, %s1022_s13  }
  0x40   : > { %s635_s30 = sshll.u32 %s204_s8, 7  ;;  %s205_s14 = scalar_lea.sflag [#allocation9], %s204_s8 }
  0x41   : > { %s1283_s17 = scalar_lea.vmem [#allocation8], %s635_s30 }
  0x42   : > { %997 = dma.done.wait (%p1232_p10), %s205_s14, 2048  }
  0x43   : > { %999 = vsyncadd (%p1232_p10), %s205_s14, 4294965248  ;;  %s232_s4 = sand.u32 1, %s1010_s10   ;;  %p637_p7 = scmp.ne.s32.totalorder %s1042_s18, 0 }
  0x44   : > { %s636_s24 = sshll.u32 %s232_s4, 5 }
  0x45   : > { %s1292_s26 = scalar_lea.vmem [#allocation10], %s636_s24  ;;  %241 = sbr.rel (%p637_p7) target bundleno = 84 (0x54), region = 40 }
  0x4a   : > { %v1064_v0 = vmov 0.0   ;;  %vm246_vm0 = vcmask 7168  }
  0x4b   : > { %242 = vst [vmem:[#allocation2 + $0x10] sm:$0xff] %v1064_v0 }
  0x4c   : > { %243 = vst [vmem:[#allocation2] sm:$0xff] %v1064_v0 }
  0x4d   : > { %244 = vst [vmem:[#allocation2 + $0x18] sm:$0xff] %v1064_v0 }
  0x4e   : > { %245 = vst [vmem:[#allocation2 + $0x8] sm:$0xff] %v1064_v0 }
  0x4f   : > { %251 = vst [vmem:[#allocation4] sm:$0x1] %v1064_v0 }
  0x50   : > { %247 = vst.msk [vmem:[#allocation3] sm:$0xff] %vm246_vm0, %v1064_v0 }
  0x51   : > { %248 = vst.msk [vmem:[#allocation3 + $0x8] sm:$0xff] %vm246_vm0, %v1064_v0 }
  0x52   : > { %249 = vst.msk [vmem:[#allocation3 + $0x10] sm:$0xff] %vm246_vm0, %v1064_v0 }
  0x53   : > { %250 = vst.msk [vmem:[#allocation3 + $0x18] sm:$0xff] %vm246_vm0, %v1064_v0 }
  0x54 PF: > { %v1296_v1 = vld [vmem:[%s1283_s17 + $0x78] sm:$0xff]  ;;  %v1299_v2 = vld [vmem:[%s1283_s17 + $0x70] sm:$0xff]  ;;  %v1304_v3 = vld [vmem:[%s1283_s17 + $0x68] sm:$0xff]  ;;  %vm333_vm1 = vcmask 7168   ;;  %p638_p8 = scmp.ne.s32.totalorder %s1042_s18, 2 }
  0x55   : > { %648 = vmatpush.msra.mxu2 %v1296_v1  ;;  %649 = vmatpush.msra.mxu3 %v1296_v1  ;;  %v1311_v4 = vld [vmem:[%s1283_s17 + $0x60] sm:$0xff]  ;;  %v1316_v5 = vld [vmem:[%s1283_s17 + $0x8] sm:$0xff]  ;;  %v1321_v6 = vld [vmem:[%s1283_s17 + $0x10] sm:$0xff]  ;;  %v352_v40 = vmul.f32 %v1304_v3, %v1304_v3  ;;  %v353_v45 = vmul.f32 %v1299_v2, %v1299_v2  ;;  %v354_v50 = vmul.f32 %v1296_v1, %v1296_v1 }
  0x56   : > { %276 = vmatpush.msra.mxu0 %v1296_v1  ;;  %647 = vmatpush.msra.mxu1 %v1296_v1  ;;  %v340_v7 = vmul.f32 %v1316_v5, %v1316_v5  ;;  %v1326_v8 = vld [vmem:[%s1283_s17] sm:$0xff]  ;;  %v267_v9 = vld [vmem:[%s1283_s17 + $0x58] sm:$0xff]  ;;  %v341_v10 = vmul.f32 %v1321_v6, %v1321_v6  ;;  %v266_v13 = vld [vmem:[%s1283_s17 + $0x50] sm:$0xff]  ;;  %v351_v38 = vmul.f32 %v1311_v4, %v1311_v4 }
  0x57   : > { %651 = vmatpush.msra.mxu2 %v1299_v2  ;;  %652 = vmatpush.msra.mxu3 %v1299_v2  ;;  %v339_v11 = vmul.f32 %v1326_v8, %v1326_v8  ;;  %v1338_v12 = vld [vmem:[%s1283_s17 + $0x18] sm:$0xff]  ;;  %v260_v16 = vld [vmem:[%s1283_s17 + $0x20] sm:$0xff]  ;;  %v265_v17 = vld [vmem:[%s1283_s17 + $0x48] sm:$0xff]  ;;  %v349_v34 = vmul.f32 %v266_v13, %v266_v13  ;;  %v350_v36 = vmul.f32 %v267_v9, %v267_v9 }
  0x58   : > { %277 = vmatpush.msra.mxu0 %v1299_v2  ;;  %650 = vmatpush.msra.mxu1 %v1299_v2  ;;  %v342_v14 = vmul.f32 %v1338_v12, %v1338_v12  ;;  %v343_v18 = vmul.f32 %v260_v16, %v260_v16  ;;  %v261_v20 = vld [vmem:[%s1283_s17 + $0x28] sm:$0xff]  ;;  %v264_v21 = vld [vmem:[%s1283_s17 + $0x40] sm:$0xff]  ;;  %v262_v24 = vld [vmem:[%s1283_s17 + $0x30] sm:$0xff]  ;;  %v348_v32 = vmul.f32 %v265_v17, %v265_v17 }
  0x59   : > { %654 = vmatpush.msra.mxu2 %v1304_v3  ;;  %655 = vmatpush.msra.mxu3 %v1304_v3  ;;  %v355_v15 = vadd.f32 %v340_v7, %v339_v11  ;;  %v344_v22 = vmul.f32 %v261_v20, %v261_v20  ;;  %v263_v25 = vld [vmem:[%s1283_s17 + $0x38] sm:$0xff]  ;;  %v345_v26 = vmul.f32 %v262_v24, %v262_v24  ;;  %v252_v42 = vld [vmem:[%s1276_s27] sm:$0xff]  ;;  %v254_v43 = vld [vmem:[%s1276_s27 + $0x10] sm:$0xff] }
  0x5a   : > { %278 = vmatpush.msra.mxu0 %v1304_v3  ;;  %653 = vmatpush.msra.mxu1 %v1304_v3  ;;  %v346_v28 = vmul.f32 %v263_v25, %v263_v25  ;;  %v347_v30 = vmul.f32 %v264_v21, %v264_v21  ;;  %v255_v44 = vld [vmem:[%s1276_s27 + $0x18] sm:$0xff]  ;;  %v253_v47 = vld [vmem:[%s1276_s27 + $0x8] sm:$0xff]  ;;  %v319_v48 = vmul.f32 %v254_v43, %v254_v43 }
  0x5b   : > { %657 = vmatpush.msra.mxu2 %v1311_v4  ;;  %658 = vmatpush.msra.mxu3 %v1311_v4  ;;  %v356_v19 = vadd.f32 %v355_v15, %v341_v10  ;;  %v317_v49 = vmul.f32 %v252_v42, %v252_v42  ;;  %v320_v55 = vmul.f32 %v255_v44, %v255_v44  ;;  %v338_v61 = vld [vmem:[#allocation4] sm:$0x1]  ;;  %v315_v0 = vld [vmem:[#allocation3 + $0x10] sm:$0xff]  ;;  %v314_v7 = vld [vmem:[#allocation3 + $0x8] sm:$0xff] }
  0x5c   : > { %279 = vmatpush.msra.mxu0 %v1311_v4  ;;  %656 = vmatpush.msra.mxu1 %v1311_v4  ;;  %v318_v56 = vmul.f32 %v253_v47, %v253_v47  ;;  %v313_v1 = vld [vmem:[#allocation3] sm:$0xff] }
  0x5d   : > { %660 = vmatpush.msra.mxu2 %v267_v9  ;;  %661 = vmatpush.msra.mxu3 %v267_v9  ;;  %v357_v23 = vadd.f32 %v356_v19, %v342_v14  ;;  %v274_v19 = vld [vmem:[#allocation2 + $0x18] sm:$0xff] }
  0x5e   : > { %280 = vmatpush.msra.mxu0 %v267_v9  ;;  %659 = vmatpush.msra.mxu1 %v267_v9  ;;  %v272_v9 = vld [vmem:[#allocation2 + $0x10] sm:$0xff] }
  0x5f   : > { %663 = vmatpush.msra.mxu2 %v266_v13  ;;  %664 = vmatpush.msra.mxu3 %v266_v13  ;;  %v358_v27 = vadd.f32 %v357_v23, %v343_v18  ;;  %v275_v18 = vld [vmem:[#allocation2 + $0x8] sm:$0xff] }
  0x60   : > { %281 = vmatpush.msra.mxu0 %v266_v13  ;;  %662 = vmatpush.msra.mxu1 %v266_v13 }
  0x61   : > { %666 = vmatpush.msra.mxu2 %v265_v17  ;;  %667 = vmatpush.msra.mxu3 %v265_v17  ;;  %v359_v29 = vadd.f32 %v358_v27, %v344_v22 }
  0x62   : > { %282 = vmatpush.msra.mxu0 %v265_v17  ;;  %665 = vmatpush.msra.mxu1 %v265_v17 }
  0x63   : > { %669 = vmatpush.msra.mxu2 %v264_v21  ;;  %670 = vmatpush.msra.mxu3 %v264_v21  ;;  %v360_v31 = vadd.f32 %v359_v29, %v345_v26 }
  0x64   : > { %283 = vmatpush.msra.mxu0 %v264_v21  ;;  %668 = vmatpush.msra.mxu1 %v264_v21 }
  0x65   : > { %672 = vmatpush.msra.mxu2 %v263_v25  ;;  %673 = vmatpush.msra.mxu3 %v263_v25  ;;  %v361_v33 = vadd.f32 %v360_v31, %v346_v28 }
  0x66   : > { %284 = vmatpush.msra.mxu0 %v263_v25  ;;  %671 = vmatpush.msra.mxu1 %v263_v25 }
  0x67   : > { %675 = vmatpush.msra.mxu2 %v262_v24  ;;  %676 = vmatpush.msra.mxu3 %v262_v24  ;;  %v362_v35 = vadd.f32 %v361_v33, %v347_v30 }
  0x68   : > { %285 = vmatpush.msra.mxu0 %v262_v24  ;;  %674 = vmatpush.msra.mxu1 %v262_v24 }
  0x69   : > { %678 = vmatpush.msra.mxu2 %v261_v20  ;;  %679 = vmatpush.msra.mxu3 %v261_v20  ;;  %v363_v37 = vadd.f32 %v362_v35, %v348_v32 }
  0x6a   : > { %286 = vmatpush.msra.mxu0 %v261_v20  ;;  %677 = vmatpush.msra.mxu1 %v261_v20 }
  0x6b   : > { %681 = vmatpush.msra.mxu2 %v260_v16  ;;  %682 = vmatpush.msra.mxu3 %v260_v16  ;;  %v364_v39 = vadd.f32 %v363_v37, %v349_v34 }
  0x6c   : > { %287 = vmatpush.msra.mxu0 %v260_v16  ;;  %680 = vmatpush.msra.mxu1 %v260_v16 }
  0x6d   : > { %684 = vmatpush.msra.mxu2 %v1338_v12  ;;  %685 = vmatpush.msra.mxu3 %v1338_v12  ;;  %v365_v41 = vadd.f32 %v364_v39, %v350_v36 }
  0x6e   : > { %288 = vmatpush.msra.mxu0 %v1338_v12  ;;  %683 = vmatpush.msra.mxu1 %v1338_v12 }
  0x6f   : > { %687 = vmatpush.msra.mxu2 %v1321_v6  ;;  %688 = vmatpush.msra.mxu3 %v1321_v6  ;;  %v366_v46 = vadd.f32 %v365_v41, %v351_v38 }
  0x70   : > { %289 = vmatpush.msra.mxu0 %v1321_v6  ;;  %686 = vmatpush.msra.mxu1 %v1321_v6  ;;  %v316_v6 = vld [vmem:[#allocation3 + $0x18] sm:$0xff] }
  0x71   : > { %690 = vmatpush.msra.mxu2 %v1316_v5  ;;  %691 = vmatpush.msra.mxu3 %v1316_v5  ;;  %v367_v51 = vadd.f32 %v366_v46, %v352_v40 }
  0x72   : > { %290 = vmatpush.msra.mxu0 %v1316_v5  ;;  %689 = vmatpush.msra.mxu1 %v1316_v5 }
  0x73   : > { %693 = vmatpush.msra.mxu2 %v1326_v8  ;;  %694 = vmatpush.msra.mxu3 %v1326_v8  ;;  %v368_v52 = vadd.f32 %v367_v51, %v353_v45 }
  0x74   : > { %298 = vmatmul.f32.vlgmr.msra.gmra.mxu2 %v254_v43  ;;  %301 = vmatmul.f32.vlgmr.msra.gmra.mxu3 %v255_v44 }
  0x75   : > { %291 = vmatpush.msra.mxu0 %v1326_v8  ;;  %692 = vmatpush.msra.mxu1 %v1326_v8  ;;  %v369_v53 = vadd.f32 %v368_v52, %v354_v50  ;;  %v273_v8 = vld [vmem:[#allocation2] sm:$0xff] }
  0x76   : > { %292 = vmatmul.f32.vlgmr.msra.gmra.mxu0 %v252_v42  ;;  %295 = vmatmul.f32.vlgmr.msra.gmra.mxu1 %v253_v47 }
  0x77   : > { %325 = vadd.xlane.f32.xlu1 %v319_v48  ;;  %321 = vadd.xlane.f32.xlu0 %v317_v49  ;;  %v370_v54 = vrot.slane %v369_v53, 4 }
  0x79   : > { %v371_v57 = vadd.f32 %v370_v54, %v369_v53 }
  0x7b   : > { %v372_v58 = vrot.slane %v371_v57, 2 }
  0x7d   : > { %v373_v59 = vadd.f32 %v372_v58, %v371_v57 }
  0x7f   : > { %327 = vadd.xlane.f32.xlu1 %v320_v55  ;;  %323 = vadd.xlane.f32.xlu0 %v318_v56  ;;  %v374_v60 = vrot.slane %v373_v59, 1 }
  0x81   : > { %v375_v62 = vadd.f32 %v374_v60, %v373_v59 }
  0x83   : > { %v376_v63 = vadd.f32 %v375_v62, %v338_v61 }
  0x85   : > { %377 = vst [vmem:[#allocation4] sm:$0x1] %v376_v63 }
  0xea   : > { %v326_v2 = vpop.xlane.xlu1 %325  ;;  %v322_v3 = vpop.xlane.xlu0 %321 }
  0xeb   : > { %v331_v4 = vadd.f32 %v326_v2, %v315_v0  ;;  %v329_v5 = vadd.f32 %v322_v3, %v313_v1 }
  0xed   : > { %336 = vst.msk [vmem:[#allocation3 + $0x10] sm:$0xff] %vm333_vm1, %v331_v4 }
  0xee   : > { %334 = vst.msk [vmem:[#allocation3] sm:$0xff] %vm333_vm1, %v329_v5 }
  0xf2   : > { %v328_v10 = vpop.xlane.xlu1 %327  ;;  %v324_v11 = vpop.xlane.xlu0 %323 }
  0xf3   : > { %v332_v12 = vadd.f32 %v328_v10, %v316_v6  ;;  %v296_v13 = vpop.f32.mrf.mxu1  ;;  %v330_v14 = vadd.f32 %v324_v11, %v314_v7  ;;  %v293_v15 = vpop.f32.mrf.mxu0 }
  0xf4   : > { %v306_v16 = vadd.f32 %v296_v13, %v273_v8  ;;  %v305_v17 = vadd.f32 %v293_v15, %v272_v9 }
  0xf5   : > { %337 = vst.msk [vmem:[#allocation3 + $0x18] sm:$0xff] %vm333_vm1, %v332_v12 }
  0xf6   : > { %310 = vst [vmem:[#allocation2] sm:$0xff] %v306_v16 }
  0xf7   : > { %v302_v20 = vpop.f32.mrf.mxu3  ;;  %v299_v21 = vpop.f32.mrf.mxu2  ;;  %335 = vst.msk [vmem:[#allocation3 + $0x8] sm:$0xff] %vm333_vm1, %v330_v14  ;;  %381 = sbr.rel (%p638_p8) target bundleno = 404 (0x194), region = 44 }
  0xf8   : > { %v308_v22 = vadd.f32 %v302_v20, %v275_v18  ;;  %v307_v23 = vadd.f32 %v299_v21, %v274_v19  ;;  %309 = vst [vmem:[#allocation2 + $0x10] sm:$0xff] %v305_v17 }
  0xfa   : > { %312 = vst [vmem:[#allocation2 + $0x8] sm:$0xff] %v308_v22 }
  0xfb   : > { %311 = vst [vmem:[#allocation2 + $0x18] sm:$0xff] %v307_v23 }
  0xfc   : > { %v384_v24 = vld [vmem:[#allocation3 + $0x10] sm:$0xff]  ;;  %v382_v25 = vld [vmem:[#allocation3] sm:$0xff]  ;;  %v385_v26 = vld [vmem:[#allocation3 + $0x18] sm:$0xff]  ;;  %v1065_v27 = vmov 0  }
  0xfd   : > { %837 = vset.pattern.permute.xlu1 %v1065_v27  ;;  %836 = vset.pattern.permute.xlu0 %v1065_v27  ;;  %v388_v28 = vmax.f32 %v384_v24, 1e-24  ;;  %v386_v29 = vmax.f32 %v382_v25, 1e-24  ;;  %v389_v30 = vmax.f32 %v385_v26, 1e-24 }
  0xfe   : > { %v383_v31 = vld [vmem:[#allocation3 + $0x8] sm:$0xff]  ;;  %v430_v61 = vld [vmem:[#allocation4] sm:$0x1] }
  0xff   : > { %838 = vrsqrt.f32 %v388_v28  ;;  %v387_v32 = vmax.f32 %v383_v31, 1e-24  ;;  %vm416_vm2 = vweird.f32 %v388_v28  ;;  %vm396_vm4 = vweird.f32 %v386_v29  ;;  %v442_v8 = vld [vmem:[#allocation2 + $0x10] sm:$0xff]  ;;  %v443_v18 = vld [vmem:[#allocation2] sm:$0xff] }
 0x100   : > { %840 = vrsqrt.f32 %v386_v29  ;;  %vm426_vm8 = vweird.f32 %v389_v30  ;;  %v431_v62 = vmax.f32 %v430_v61, 1e-24 }
 0x101   : > { %842 = vrsqrt.f32 %v389_v30  ;;  %vm406_vm10 = vweird.f32 %v387_v32  ;;  %v445_v17 = vld [vmem:[#allocation2 + $0x8] sm:$0xff] }
 0x102   : > { %844 = vrsqrt.f32 %v387_v32  ;;  %vm438_vm14 = vweird.f32 %v431_v62  ;;  %v444_v6 = vld [vmem:[#allocation2 + $0x18] sm:$0xff] }
 0x103   : > { %846 = vrsqrt.f32 %v431_v62 }
 0x105   : > { %v839_v33 = vpop.eup %838 }
 0x106   : > { %v841_v34 = vpop.eup %840  ;;  %v411_v35 = vmul.f32 %v839_v33, %v388_v28  ;;  %vm417_vm3 = vweird.f32 %v839_v33 }
 0x107   : > { %v843_v36 = vpop.eup %842  ;;  %v391_v37 = vmul.f32 %v841_v34, %v386_v29  ;;  %vm397_vm5 = vweird.f32 %v841_v34  ;;  %vm418_vm6 = vmor %vm416_vm2, %vm417_vm3 }
 0x108   : > { %v845_v38 = vpop.eup %844  ;;  %v412_v39 = vmul.f32 %v839_v33, %v411_v35  ;;  %v421_v40 = vmul.f32 %v843_v36, %v389_v30  ;;  %vm398_vm7 = vmor %vm396_vm4, %vm397_vm5  ;;  %vm427_vm9 = vweird.f32 %v843_v36 }
 0x109   : > { %v392_v41 = vmul.f32 %v841_v34, %v391_v37  ;;  %v401_v42 = vmul.f32 %v845_v38, %v387_v32  ;;  %vm407_vm11 = vweird.f32 %v845_v38  ;;  %vm428_vm12 = vmor %vm426_vm8, %vm427_vm9  ;;  %v847_v63 = vpop.eup %846 }
 0x10a   : > { %v413_v43 = vmul.f32 0.5, %v412_v39  ;;  %v422_v44 = vmul.f32 %v843_v36, %v421_v40  ;;  %vm408_vm13 = vmor %vm406_vm10, %vm407_vm11  ;;  %v433_v0 = vmul.f32 %v847_v63, %v431_v62  ;;  %vm439_vm15 = vweird.f32 %v847_v63 }
 0x10b   : > { %v393_v45 = vmul.f32 0.5, %v392_v41  ;;  %v402_v46 = vmul.f32 %v845_v38, %v401_v42  ;;  %vm440_vm0 = vmor %vm438_vm14, %vm439_vm15 }
 0x10c   : > { %v414_v47 = vsub.f32 1.5, %v413_v43  ;;  %v423_v48 = vmul.f32 0.5, %v422_v44  ;;  %v434_v1 = vmul.f32 %v847_v63, %v433_v0 }
 0x10d   : > { %v394_v49 = vsub.f32 1.5, %v393_v45  ;;  %v403_v50 = vmul.f32 0.5, %v402_v46 }
 0x10e   : > { %v415_v51 = vmul.f32 %v839_v33, %v414_v47  ;;  %v424_v52 = vsub.f32 1.5, %v423_v48  ;;  %v435_v2 = vmul.f32 0.5, %v434_v1 }
 0x10f   : > { %v395_v53 = vmul.f32 %v841_v34, %v394_v49  ;;  %v404_v54 = vsub.f32 1.5, %v403_v50 }
 0x110   : > { %v419_v55 = vsel %vm418_vm6, %v839_v33, %v415_v51  ;;  %v425_v57 = vmul.f32 %v843_v36, %v424_v52  ;;  %v436_v3 = vsub.f32 1.5, %v435_v2 }
 0x111   : > { %458 = vperm.xlu1 %837, %v419_v55   ;;  %v399_v56 = vsel %vm398_vm7, %v841_v34, %v395_v53  ;;  %v405_v58 = vmul.f32 %v845_v38, %v404_v54 }
 0x112   : > { %448 = vperm.xlu0 %836, %v399_v56   ;;  %v429_v59 = vsel %vm428_vm12, %v843_v36, %v425_v57  ;;  %v437_v4 = vmul.f32 %v847_v63, %v436_v3 }
 0x113   : > { %v409_v60 = vsel %vm408_vm13, %v845_v38, %v405_v58 }
 0x114   : > { %v441_v5 = vsel %vm440_vm0, %v847_v63, %v437_v4 }
 0x115   : > { %v471_v7 = vperm.slane %v441_v5, 0 }
 0x119   : > { %463 = vperm.xlu1 %837, %v429_v59  }
 0x11a   : > { %453 = vperm.xlu0 %836, %v409_v60  }
 0x183   : > { %v459_v9 = vpop.permute.xlu1 %458 }
 0x184   : > { %v468_v10 = vmul.f32 %v459_v9, %v444_v6  ;;  %v449_v11 = vpop.permute.xlu0 %448 }
 0x185   : > { %v466_v12 = vmul.f32 %v449_v11, %v442_v8 }
 0x186   : > { %v475_v13 = vmul.f32 %v471_v7, %v468_v10 }
 0x187   : > { %v473_v14 = vmul.f32 %v471_v7, %v466_v12 }
 0x188   : > { %v641_v15 = vclamps-f32 %v475_v13, 0.9999999 }
 0x189   : > { %v639_v16 = vclamps-f32 %v473_v14, 0.9999999 }
 0x18a   : > { %487 = vst [vmem:[%s1292_s26 + $0x10] sm:$0xff] %v641_v15 }
 0x18b   : > { %485 = vst [vmem:[%s1292_s26] sm:$0xff] %v639_v16  ;;  %v464_v19 = vpop.permute.xlu1 %463 }
 0x18c   : > { %v469_v20 = vmul.f32 %v464_v19, %v445_v17  ;;  %v454_v21 = vpop.permute.xlu0 %453 }
 0x18d   : > { %v467_v22 = vmul.f32 %v454_v21, %v443_v18 }
 0x18e   : > { %v476_v23 = vmul.f32 %v471_v7, %v469_v20 }
 0x18f   : > { %v474_v24 = vmul.f32 %v471_v7, %v467_v22 }
 0x190   : > { %v642_v25 = vclamps-f32 %v476_v23, 0.9999999 }
 0x191   : > { %v640_v26 = vclamps-f32 %v474_v24, 0.9999999 }
 0x192   : > { %488 = vst [vmem:[%s1292_s26 + $0x18] sm:$0xff] %v642_v25 }
 0x193   : > { %486 = vst [vmem:[%s1292_s26 + $0x8] sm:$0xff] %v640_v26 }
 0x194 PF: > { %s1492_s18 = sld [smem:[#allocation16_spill]]  ;;  %s504_s25 = sshll.u32 %s1292_s26, 4  ;;  %s505_s25 = int_to_ptr.vmem [resolvable:$true] %s504_s25 }
 0x195   : > { %s1493_s28 = sld [smem:[#allocation23_spill]]  ;;  %s490_s15 = scalar_lea.sflag [#allocation7], %s232_s4 }
 0x19a   : > { %s644_s3 = sshll.u32 %s1492_s18, 3 }
 0x19b   : > { %s503_s12 = scalar_lea.hbm %s1493_s28, %s644_s3  ;;  %s928_s8 = scalar_lea.hbm %s1493_s28, 160 }
 0x19c   : > { %s506_s2 = sshll.u32 %s503_s12, 4  ;;  %s507_s2 = int_to_ptr.hbm [resolvable:$true] %s506_s2 }
 0x19d   : > { %s922_s0 = sshra.s32 %s507_s2, 4  ;;  %s923_s0 = int_to_ptr.hbm [resolvable:$true] %s922_s0 }
 0x19e   : > { %s924_s5 = scalar_lea.hbm %s923_s0, 32  ;;  %p929_p0 = scmp.lt.s32.totalorder %s923_s0, %s1493_s28 }
 0x19f   : > { %p925_p13 = scmp.ne.s32.totalorder %s923_s0, %s924_s5  ;;  %p930_p11 = scmp.lt.s32.totalorder %s928_s8, %s924_s5 }
 0x1a1   : > { %p926_p6 = pnand %p925_p13, %p1247_p9  ;;  %p931_p12 = por %p930_p11, %p929_p0 }
 0x1a3   : > { %p927_p10 = pneg %p926_p6 }
 0x1a5   : > { %p932_p2 = pnand %p931_p12, %p927_p10 }
 0x1a7   : > { %935 = shalt.err (!%p932_p2)
}
 0x1a8   : > { %s1066_s17 = smov 128   ;;  %s1067_s4 = smov 640  }
 0x1a9   : > { %s1068_s24 = smov 8  }
 0x1aa   : > { %700 = dma.vmem_to_hbm [thread:$0]  (%p1247_p9), %s505_s25, 512, %s507_s2, %s490_s15, %s1066_s17, %s1067_s4, %s1068_s24  }
 0x1ab PF: > { %p714_p1 = scmp.ge.s32.totalorder %s1058_s22, 2  ;;  %s521_s26 = sand.u32 1, %s1006_s9  }
 0x1ac   : > { %s522_s18 = scalar_lea.sflag [#allocation7], %s521_s26 }
 0x1ad   : > { %p710_p3 = pnand %p714_p1, %p1257_p5 }
 0x1af   : > { %p711_p4 = pneg %p710_p3 }
 0x1b1   : > { %1001 = dma.done.wait (%p711_p4), %s522_s18, 512  }
 0x1b2   : > { %1003 = vsyncadd (%p711_p4), %s522_s18, 4294966784  ;;  %s21_s22 = sadd.s32 1, %s1058_s22   ;;  %s1495_s29 = sld [smem:[#allocation20_spill]] }
 0x1b3   : > { %p1410_p7 = scmp.ge.s32.totalorder %s21_s22, 17   ;;  %s1496_s23 = sld [smem:[#allocation14_spill]] }
 0x1b4   : > { %s1497_s14 = sld [smem:[#allocation21_spill]]  ;;  %s1502_s9 = smov %s1010_s10 }
 0x1b5   : > { %s1498_s7 = sld [smem:[#allocation15_spill]]  ;;  %s1503_s10 = smov %s1014_s11 }
 0x1b6   : > { %s1499_s17 = sld [smem:[#allocation18_spill]]  ;;  %s1505_s12 = smov %s1022_s13 }
 0x1b7   : > { %s1500_s6 = sld [smem:[#allocation17_spill]]  ;;  %s1507_s15 = smov %s1034_s16 }
 0x1b8   : > { %s1501_s25 = sld [smem:[#allocation19_spill]]  ;;  %s1504_s11 = smov %s1495_s29 }
 0x1b9   : > { %s1506_s13 = smov %s1496_s23  ;;  %s1509_s18 = smov %s1050_s20 }
 0x1ba   : > { %s1510_s19 = smov %s1054_s21  ;;  %20 = sbr.rel (!%p1410_p7) target bundleno = 15 (0xf), region = 94 }
 0x1bb   : > { %s1508_s16 = smov %s1498_s7 }
 0x1bd   : > { %s1511_s20 = smov %s1500_s6 }
 0x1be   : > { %s1512_s21 = smov %s1501_s25 }
 0x1bf   :  { %528 = vsyncpa [#allocation6], 1 }
 0x1c0   :  { %530 = vsyncpa [#allocation6 + $0x1], 1 }
 0x1c1   :  { %531 = vsyncpa [#allocation9], 1 }
 0x1c2   :  { %533 = vsyncpa [#allocation9 + $0x1], 1 }
 0x1c3   :  { %534 = vsyncpa [#allocation7], 1 }
 0x1c4   :  { %536 = vsyncpa [#allocation7 + $0x1], 1 }

</bundles_post_ra>
